<compile_context>
chip_gen: v6e
topology: v6e:2x2x1
jax: 0.10.0
libtpu: 0.0.40
codegen_flags: <defaults>
</compile_context>

<pallas_src>
import functools
import math

import jax
import jax.numpy as jnp
from jax import lax
from jax.experimental import pallas as pl
from jax.experimental.pallas import tpu as pltpu


def _bert_emb_kernel(x_ref, add_ref, gamma_ref, beta_ref, o_ref, *, eps):
    # x_ref:          (TS, H)  inputs_embeds tile (leading batch dim squeezed)
    # add_ref:        (TS, H)  pos(+type) embedding rows for this sequence tile
    # gamma/beta_ref: (1, H)   LayerNorm affine params
    emb = x_ref[...].astype(jnp.float32) + add_ref[...].astype(jnp.float32)

    # LayerNorm over the hidden (lane) axis, biased variance (PyTorch semantics).
    mean = jnp.mean(emb, axis=-1, keepdims=True)
    emb = emb - mean                      # center in place: no extra temporary
    var = jnp.mean(emb * emb, axis=-1, keepdims=True)
    emb = emb * lax.rsqrt(var + eps)

    o_ref[...] = (emb * gamma_ref[...].astype(jnp.float32)
                  + beta_ref[...].astype(jnp.float32)).astype(o_ref.dtype)


def _auto_seq_tile(S, H, itemsize, budget_bytes):
    """Largest layout-legal sequence tile whose pipelined footprint fits budget."""
    sublane = {4: 8, 2: 16, 1: 32}.get(itemsize, 8)
    # ~double-buffered x/add/out streams + f32 LayerNorm temporaries per row.
    per_row = H * (6 * itemsize + 8)
    max_rows = max(sublane, budget_bytes // per_row)
    if S <= max_rows:
        return S                          # single tile covers the full sequence
    best = 0
    for d in range(1, int(math.isqrt(S)) + 1):
        if S % d == 0:
            for cand in (d, S // d):
                if cand % sublane == 0 and cand <= max_rows and cand > best:
                    best = cand
    if best:
        return best
    # No sublane-aligned divisor under the budget; fall back to the largest
    # sublane-aligned divisor (may need a raised vmem limit), else full dim.
    for d in range(1, int(math.isqrt(S)) + 1):
        if S % d == 0:
            for cand in (d, S // d):
                if cand % sublane == 0 and cand > best:
                    best = cand
    return best or S


def bert_embeddings(inputs_embeds, pos_table, type_table, gamma, beta,
                    *, eps=1e-12, use_type_embeddings=True, seq_tile=None,
                    vmem_budget_bytes=12 * 1024 * 1024):
    """Pallas implementation of BertEmbeddings.forward with default ids.

    inputs_embeds: (B, S, H)
    pos_table:     (P, H) with P >= S
    type_table:    (T, H) (row 0 used: default token_type_ids == 0), or None
    gamma, beta:   (H,)
    """
    B, S, H = inputs_embeds.shape
    if pos_table.shape[0] < S:
        raise ValueError("pos_table has fewer rows than the sequence length")

    # Fold position + token-type embeddings into one additive (S, H) table
    # outside the kernel (tiny XLA add) -> one fewer DMA stream in the hot loop.
    add_table = pos_table[:S]
    if use_type_embeddings and type_table is not None:
        add_table = add_table + type_table[0][None, :]

    itemsize = jnp.dtype(inputs_embeds.dtype).itemsize
    sublane = {4: 8, 2: 16, 1: 32}.get(itemsize, 8)
    TS = _auto_seq_tile(S, H, itemsize, vmem_budget_bytes) if seq_tile is None \
        else seq_tile
    assert S % TS == 0, "S must be divisible by the sequence tile"
    assert TS == S or TS % sublane == 0, (
        "sequence tile must be the full sequence or a multiple of the sublane")

    gamma2 = gamma.reshape(1, H)
    beta2 = beta.reshape(1, H)

    kernel = functools.partial(_bert_emb_kernel, eps=eps)

    # Batch is the innermost grid axis so the additive-table block (index (s,0))
    # is constant across it and is not re-fetched B times.
    grid = (S // TS, B)
    return pl.pallas_call(
        kernel,
        out_shape=jax.ShapeDtypeStruct((B, S, H), inputs_embeds.dtype),
        grid_spec=pltpu.PrefetchScalarGridSpec(
            num_scalar_prefetch=0,
            grid=grid,
            in_specs=[
                # inputs_embeds tile, leading batch dim squeezed -> kernel (TS, H)
                pl.BlockSpec((pl.Squeezed(), TS, H), lambda s, b: (b, s, 0)),
                # pos(+type) rows [s*TS, (s+1)*TS) == arange positions
                pl.BlockSpec((TS, H), lambda s, b: (s, 0)),
                # LayerNorm gamma / beta (broadcast)
                pl.BlockSpec((1, H), lambda s, b: (0, 0)),
                pl.BlockSpec((1, H), lambda s, b: (0, 0)),
            ],
            out_specs=pl.BlockSpec((pl.Squeezed(), TS, H),
                                   lambda s, b: (b, s, 0)),
        ),
        compiler_params=pltpu.CompilerParams(
            dimension_semantics=("parallel", "parallel")),
    )(inputs_embeds, add_table, gamma2, beta2)


def bert_embeddings_ref(inputs_embeds, pos_table, type_table, gamma, beta,
                        *, eps=1e-12, use_type_embeddings=True):
    B, S, H = inputs_embeds.shape
    emb = inputs_embeds + pos_table[:S][None, :, :]
    if use_type_embeddings:
        emb = emb + type_table[0][None, None, :]
    mean = jnp.mean(emb, axis=-1, keepdims=True)
    var = jnp.mean((emb - mean) ** 2, axis=-1, keepdims=True)
    normed = (emb - mean) / jnp.sqrt(var + eps)
    return normed * gamma + beta


if __name__ == "__main__":
    # Small config consistent with the module.
    B, S, H = 2, 16, 32
    max_position_embeddings = 32
    type_vocab_size = 2
    eps = 1e-12

    key = jax.random.PRNGKey(0)
    k_in, k_pos, k_type, k_g, k_b = jax.random.split(key, 5)

    inputs_embeds = jax.random.normal(k_in, (B, S, H), jnp.float32)
    pos_table = 0.02 * jax.random.normal(
        k_pos, (max_position_embeddings, H), jnp.float32)
    type_table = 0.02 * jax.random.normal(
        k_type, (type_vocab_size, H), jnp.float32)
    gamma = 1.0 + 0.01 * jax.random.normal(k_g, (H,), jnp.float32)
    beta = 0.01 * jax.random.normal(k_b, (H,), jnp.float32)

    # With type embeddings (token_type_ids default == 0).
    out_t = bert_embeddings(inputs_embeds, pos_table, type_table, gamma, beta,
                            eps=eps, use_type_embeddings=True)
    out_t = jax.block_until_ready(out_t)
    ref_t = bert_embeddings_ref(inputs_embeds, pos_table, type_table, gamma,
                                beta, eps=eps, use_type_embeddings=True)
    assert out_t.shape == (B, S, H)
    assert jnp.max(jnp.abs(out_t - ref_t)) < 1e-4, "mismatch vs reference (typed)"

    # Module default: use_type_embeddings=False.
    out_f = bert_embeddings(inputs_embeds, pos_table, None, gamma, beta,
                            eps=eps, use_type_embeddings=False)
    out_f = jax.block_until_ready(out_f)
    ref_f = bert_embeddings_ref(inputs_embeds, pos_table, type_table, gamma,
                                beta, eps=eps, use_type_embeddings=False)
    assert jnp.max(jnp.abs(out_f - ref_f)) < 1e-4, "mismatch vs reference (untyped)"

    print("KERNEL_OK")
</pallas_src>

<mosaic_0001>
module attributes {stable_mosaic.version = 11 : i64} {
  func.func @_bert_emb_kernel(%arg0: i32, %arg1: i32, %arg2: memref<1x16x32xf32, #tpu.memory_space<vmem>>, %arg3: memref<16x32xf32, #tpu.memory_space<vmem>>, %arg4: memref<1x32xf32, #tpu.memory_space<vmem>>, %arg5: memref<1x32xf32, #tpu.memory_space<vmem>>, %arg6: memref<1x16x32xf32, #tpu.memory_space<vmem>>) attributes {dimension_semantics = [#tpu.dimension_semantics<parallel>, #tpu.dimension_semantics<parallel>], iteration_bounds = array<i64: 1, 2>, scalar_prefetch = 0 : i64, scratch_operands = 0 : i64, tpu.core_type = #tpu.core_type<tc>, window_params = [{transform_indices = @transform_0, window_bounds = array<i64: 1, 16, 32>}, {transform_indices = @transform_1, window_bounds = array<i64: 16, 32>}, {pipeline_mode = #tpu.pipeline_mode<synchronous>, transform_indices = @transform_2, window_bounds = array<i64: 1, 32>}, {pipeline_mode = #tpu.pipeline_mode<synchronous>, transform_indices = @transform_3, window_bounds = array<i64: 1, 32>}, {transform_indices = @transform_4, window_bounds = array<i64: 1, 16, 32>}]} {
    %c0 = arith.constant 0 : index
    %c0_0 = arith.constant 0 : index
    %c0_1 = arith.constant 0 : index
    %0 = vector.load %arg2[%c0, %c0_0, %c0_1] : memref<1x16x32xf32, #tpu.memory_space<vmem>>, vector<1x16x32xf32>
    %1 = vector.shape_cast %0 : vector<1x16x32xf32> to vector<16x32xf32>
    %c0_2 = arith.constant 0 : index
    %c0_3 = arith.constant 0 : index
    %2 = vector.load %arg3[%c0_2, %c0_3] : memref<16x32xf32, #tpu.memory_space<vmem>>, vector<16x32xf32>
    %3 = arith.addf %1, %2 : vector<16x32xf32>
    %cst = arith.constant dense<0.000000e+00> : vector<16xf32>
    %4 = vector.multi_reduction <add>, %3, %cst [1] : vector<16x32xf32> to vector<16xf32>
    %5 = vector.shape_cast %4 : vector<16xf32> to vector<16x1xf32>
    %cst_4 = arith.constant 3.200000e+01 : f32
    %6 = vector.broadcast %cst_4 : f32 to vector<16x1xf32>
    %7 = arith.divf %5, %6 : vector<16x1xf32>
    %8 = vector.broadcast %7 : vector<16x1xf32> to vector<16x32xf32>
    %9 = arith.subf %3, %8 : vector<16x32xf32>
    %10 = arith.mulf %9, %9 : vector<16x32xf32>
    %cst_5 = arith.constant dense<0.000000e+00> : vector<16xf32>
    %11 = vector.multi_reduction <add>, %10, %cst_5 [1] : vector<16x32xf32> to vector<16xf32>
    %12 = vector.shape_cast %11 : vector<16xf32> to vector<16x1xf32>
    %cst_6 = arith.constant 3.200000e+01 : f32
    %13 = vector.broadcast %cst_6 : f32 to vector<16x1xf32>
    %14 = arith.divf %12, %13 : vector<16x1xf32>
    %cst_7 = arith.constant 9.99999996E-13 : f32
    %15 = vector.broadcast %cst_7 : f32 to vector<16x1xf32>
    %16 = arith.addf %14, %15 : vector<16x1xf32>
    %17 = math.rsqrt %16 : vector<16x1xf32>
    %18 = vector.broadcast %17 : vector<16x1xf32> to vector<16x32xf32>
    %19 = arith.mulf %9, %18 : vector<16x32xf32>
    %c0_8 = arith.constant 0 : index
    %c0_9 = arith.constant 0 : index
    %20 = vector.load %arg4[%c0_8, %c0_9] : memref<1x32xf32, #tpu.memory_space<vmem>>, vector<1x32xf32>
    %21 = vector.broadcast %20 : vector<1x32xf32> to vector<16x32xf32>
    %22 = arith.mulf %19, %21 : vector<16x32xf32>
    %c0_10 = arith.constant 0 : index
    %c0_11 = arith.constant 0 : index
    %23 = vector.load %arg5[%c0_10, %c0_11] : memref<1x32xf32, #tpu.memory_space<vmem>>, vector<1x32xf32>
    %24 = vector.broadcast %23 : vector<1x32xf32> to vector<16x32xf32>
    %25 = arith.addf %22, %24 : vector<16x32xf32>
    %c0_12 = arith.constant 0 : index
    %c0_13 = arith.constant 0 : index
    %c0_14 = arith.constant 0 : index
    %26 = vector.load %arg6[%c0_12, %c0_13, %c0_14] : memref<1x16x32xf32, #tpu.memory_space<vmem>>, vector<1x16x32xf32>
    %27 = vector.shape_cast %26 : vector<1x16x32xf32> to vector<16x32xf32>
    %28 = vector.shape_cast %25 : vector<16x32xf32> to vector<1x16x32xf32>
    tpu.vector_store %arg6[%c0_12, %c0_13, %c0_14], %28 {strides = array<i32>} : memref<1x16x32xf32, #tpu.memory_space<vmem>>, vector<1x16x32xf32>,
    return
  }
  func.func @transform_0(%arg0: i32, %arg1: i32) -> (i32, i32, i32) {
    %c0_i32 = arith.constant 0 : i32
    %c0_i32_0 = arith.constant 0 : i32
    return %arg1, %arg0, %c0_i32 : i32, i32, i32
  }
  func.func @transform_1(%arg0: i32, %arg1: i32) -> (i32, i32) {
    %c0_i32 = arith.constant 0 : i32
    %c0_i32_0 = arith.constant 0 : i32
    return %arg0, %c0_i32 : i32, i32
  }
  func.func @transform_2(%arg0: i32, %arg1: i32) -> (i32, i32) {
    %c0_i32 = arith.constant 0 : i32
    %c0_i32_0 = arith.constant 0 : i32
    %c0_i32_1 = arith.constant 0 : i32
    return %c0_i32, %c0_i32_0 : i32, i32
  }
  func.func @transform_3(%arg0: i32, %arg1: i32) -> (i32, i32) {
    %c0_i32 = arith.constant 0 : i32
    %c0_i32_0 = arith.constant 0 : i32
    %c0_i32_1 = arith.constant 0 : i32
    return %c0_i32, %c0_i32_0 : i32, i32
  }
  func.func @transform_4(%arg0: i32, %arg1: i32) -> (i32, i32, i32) {
    %c0_i32 = arith.constant 0 : i32
    %c0_i32_0 = arith.constant 0 : i32
    return %arg1, %arg0, %c0_i32 : i32, i32, i32
  }
}

</mosaic_0001>

<bundles_post_ra>
// kernel: tpu_custom_call.1
= control target key start
LH: loop header
LB: loop body
LE: loop exit
PB: predicated region body
PF: predicated region fallthrough
CT: control target
= control target key end

     0   :  { %s906_s0 = inlined_call_operand.hbm [shape: f32[2,16,32], index: 0, kind: input, shape index: {}]   ;;  %s907_s1 = inlined_call_operand.hbm [shape: f32[16,32], index: 1, kind: input, shape index: {}]   ;;  %s908_s2 = inlined_call_operand.vmem [shape: f32[1,32], index: 2, kind: input, shape index: {}]   ;;  %s909_s3 = inlined_call_operand.vmem [shape: f32[1,32], index: 3, kind: input, shape index: {}]   ;;  %s910_s4 = inlined_call_operand.hbm [shape: f32[2,16,32], index: 4, kind: output, shape index: {}]  }
   0x1   :  { %914 = sst [smem:[#allocation11_spill]] %s907_s1 }
   0x2   :  { %9 = vsyncpa [#allocation3], 0 }
   0x3   :  { %11 = vsyncpa [#allocation3 + $0x1], 0 }
   0x4   :  { %12 = vsyncpa [#allocation6], 0 }
   0x5   :  { %13 = vsyncpa [#allocation4], 0 }
   0x6   :  { %15 = vsyncpa [#allocation4 + $0x1], 0  ;;  %s703_s15 = smov 0   ;;  %s705_s16 = smov 0  }
   0x7   :  { %s707_s17 = smov 0   ;;  %s709_s18 = smov 0  }
   0x8   :  { %s711_s19 = smov 0   ;;  %s713_s20 = smov 0  }
   0x9 LB: > { %s429_s21 = sadd.s32 4294967295, %s669_s20   ;;  %s430_s22 = sadd.s32 4294967294, %s669_s20   ;;  %s669_s20 = sphi %s713_s20, %s21_s20   ;;  %s665_s19 = sphi %s711_s19, %s934_s19   ;;  %s661_s18 = sphi %s709_s18, %s933_s18   ;;  %s657_s17 = sphi %s707_s17, %s932_s17   ;;  %s653_s16 = sphi %s705_s16, %s931_s16   ;;  %s649_s15 = sphi %s703_s15, %s930_s15  }
   0xa   : > { %p55_p0 = scmp.ne.s32.totalorder %s653_s16, %s649_s15  ;;  %p737_p1 = scmp.eq.s32.totalorder %s429_s21, 0 }
   0xb   : > { %p741_p2 = scmp.eq.s32.totalorder %s429_s21, 1  ;;  %p155_p3 = scmp.eq.s32.totalorder %s430_s22, 1 }
   0xc   : > { %p747_p4 = por %p737_p1, %p55_p0  ;;  %p431_p5 = scmp.ge.s32.totalorder %s669_s20, 1 }
   0xd   : > { %p752_p6 = por %p155_p3, %p55_p0  ;;  %p162_p7 = scmp.lt.s32.totalorder %s669_s20, 3 }
   0xe   : > { %s917_s25 = scalar_select %p747_p4, 1, 0 }
   0xf   : > { %s918_s26 = scalar_select %p752_p6, 1, 0 }
  0x10   : > { %p757_p8 = pnand %p431_p5, %p162_p7  ;;  %s671_s28 = smov [#allocation5]  }
  0x11   : > { %s177_s29 = sshll.u32 %s671_s28, 4  ;;  %s30_s5 = sadd.s32 1, %s665_s19  ;;  %s178_s29 = int_to_ptr.vmem [resolvable:$true] %s177_s29 }
  0x12   : > { %p458_p9 = pneg %p757_p8  ;;  %s542_s6 = scalar_lea.vmem %s178_s29, 256 }
  0x13   : > { %p543_p13 = scmp.ne.s32.totalorder %s178_s29, %s542_s6  ;;  %p550_p5 = scmp.lt.s32.totalorder %s178_s29, %s178_s29 }
  0x14   : > { %p766_p11 = pnand %p458_p9, %p737_p1  ;;  %p551_p7 = scmp.lt.s32.totalorder %s542_s6, %s542_s6 }
  0x16   : > { %p533_p12 = pneg %p766_p11  ;;  %p552_p6 = por %p551_p7, %p550_p5 }
  0x18   : > { %p545_p0 = pnand %p543_p13, %p533_p12 }
  0x1a   : > { %p546_p3 = pneg %p545_p0 }
  0x1c   : > { %p553_p4 = pnand %p552_p6, %p546_p3 }
  0x1e   : > { %556 = shalt.err (!%p553_p4)
}
  0x1f   : > { %s912_s7 = smov 128   ;;  %s913_s8 = smov 8  }
  0x20   : > { %s921_s1 = sld [smem:[#allocation11_spill]]  ;;  %p31_p4 = scmp.ge.s32.totalorder %s30_s5, 2 }
  0x21   : > { %s42_s11 = sadd.s32 1, %s657_s17  ;;  %p49_p6 = scmp.ne.s32.totalorder %s657_s17, %s653_s16 }
  0x22   : > { %p50_p9 = scmp.eq.s32.totalorder %s669_s20, 0  ;;  %s936_s5 = smov (%p31_p4, %s30_s5), 0 }
  0x23   : > { %p793_p13 = por %p741_p2, %p49_p6  ;;  %s37_s14 = ssub.s32 %s665_s19, %s936_s5 }
  0x24   : > { %p787_p12 = por %p50_p9, %p49_p6  ;;  %p471_p0 = scmp.lt.s32.totalorder %s669_s20, 2 }
  0x25   : > { %s197_s21 = sand.u32 1, %s657_s17  }
  0x26   : > { %461 = dma.hbm_to_vmem [thread:$0]  (!%p766_p11), %s921_s1, 256, %s178_s29, [#allocation6], %s912_s7, %s912_s7, %s913_s8  }
  0x27   : > { %p40_p11 = scmp.eq.s32.totalorder %s37_s14, 0  ;;  %s434_s22 = sshll.u32 %s197_s21, 4 }
  0x28   : > { %s448_s29 = sshll.u32 %s665_s19, 8  ;;  %s201_s10 = scalar_lea.vmem [#allocation2], %s434_s22 }
  0x29   : > { %s802_s28 = scalar_select %p40_p11, %s657_s17, %s42_s11  }
  0x2a   : > { %s209_s9 = scalar_lea.hbm %s906_s0, %s448_s29  ;;  %s210_s7 = sshll.u32 %s201_s10, 4  ;;  %s211_s7 = int_to_ptr.vmem [resolvable:$true] %s210_s7 }
  0x2b   : > { %p810_p2 = pnand %p471_p0, %p787_p12  ;;  %s198_s8 = scalar_lea.sflag [#allocation3], %s197_s21 }
  0x2c   : > { %s570_s14 = scalar_lea.vmem %s211_s7, 256  ;;  %s674_s11 = smov [#allocation2]  }
  0x2d   : > { %p559_p3 = pneg %p810_p2  ;;  %p571_p5 = scmp.ne.s32.totalorder %s211_s7, %s570_s14 }
  0x2e   : > { %s575_s1 = sshll.u32 %s674_s11, 4  ;;  %s576_s1 = int_to_ptr.vmem [resolvable:$false] %s575_s1 }
  0x2f   : > { %p573_p7 = pnand %p571_p5, %p559_p3  ;;  %s577_s29 = scalar_lea.vmem %s576_s1, 512 }
  0x30   : > { %p578_p6 = scmp.lt.s32.totalorder %s211_s7, %s576_s1  ;;  %p579_p9 = scmp.lt.s32.totalorder %s577_s29, %s570_s14 }
  0x31   : > { %p574_p4 = pneg %p573_p7 }
  0x32   : > { %p580_p11 = por %p579_p9, %p578_p6 }
  0x34   : > { %p581_p10 = pnand %p580_p11, %p574_p4 }
  0x36   : > { %584 = shalt.err (!%p581_p10)
}
  0x37   : > { %s925_s12 = smov 8   ;;  %s926_s22 = smov 128  }
  0x38   : > { %465 = dma.hbm_to_vmem [thread:$0]  (!%p810_p2), %s209_s9, 256, %s211_s7, %s198_s8, %s926_s22, %s926_s22, %s925_s12  }
  0x39   : > { %222 = sbr.rel (%p757_p8) target bundleno = 395 (0x18b), region = 36  ;;  %s824_s21 = sand.u32 (!%p757_p8), 1, %s653_s16  }
  0x3a   : > { %s438_s1 = sshll.u32 (!%p757_p8), %s824_s21, 4  ;;  %s225_s30 = scalar_lea.sflag (!%p757_p8), [#allocation3], %s824_s21 }
  0x3b   : > { %s228_s6 = scalar_lea.vmem (!%p757_p8), [#allocation2], %s438_s1  ;;  %p927_p10 = scmp.ne.s32.totalorder (!%p757_p8), %s917_s25, 0 }
  0x3e   : > { %636 = dma.done.wait (%p927_p10), %s225_s30, 256  }
  0x3f   : > { %638 = vsyncadd (%p927_p10), %s225_s30, 4294967040 }
  0x40   : > { %640 = dma.done.wait (%p737_p1), [#allocation6], 256  }
  0x41   : > { %642 = vsyncadd (%p737_p1), [#allocation6], 4294967040  ;;  %v260_v0 = vld [vmem:[%s228_s6] sm:$0xff]  ;;  %vm266_vm0 = vcmask 261120   ;;  %v261_v2 = vld [vmem:[%s228_s6 + $0x8] sm:$0xff]  ;;  %s449_s8 = sshll.u32 %s661_s18, 8 }
  0x42   : > { %v262_v1 = vld [vmem:[#allocation5] sm:$0xff]  ;;  %v263_v4 = vld [vmem:[#allocation5 + $0x8] sm:$0xff]  ;;  %s256_s9 = scalar_lea.vmem [#allocation7], %s438_s1  ;;  %s855_s11 = scalar_lea.hbm %s910_s4, %s449_s8 }
  0x43   : > { %v264_v3 = vadd.f32 %v262_v1, %v260_v0  ;;  %v265_v5 = vadd.f32 %v263_v4, %v261_v2  ;;  %v441_v25 = vld [vmem:[%s908_s2] ss:$0 sm:$0xff]  ;;  %s330_s10 = sshll.u32 %s256_s9, 4  ;;  %s315_s18 = scalar_lea.sflag [#allocation4], %s824_s21  ;;  %s857_s10 = int_to_ptr.vmem [resolvable:$true] %s330_s10 }
  0x44   : > { %v442_v27 = vld [vmem:[%s909_s3] ss:$0 sm:$0xff]  ;;  %s585_s29 = scalar_lea.vmem %s857_s10, 256  ;;  %s675_s12 = smov [#allocation7]  }
  0x45   : > { %v267_v6 = vsel %vm266_vm0, %v264_v3, 0.0  ;;  %v270_v7 = vsel %vm266_vm0, %v265_v5, 0.0  ;;  %p586_p1 = scmp.ne.s32.totalorder %s857_s10, %s585_s29  ;;  %s589_s22 = sshll.u32 %s675_s12, 4  ;;  %s590_s22 = int_to_ptr.vmem [resolvable:$false] %s589_s22 }
  0x46   : > { %268 = vadd.xlane.f32.xlu0 %v267_v6  ;;  %s591_s1 = scalar_lea.vmem %s590_s22, 512  ;;  %p592_p0 = scmp.lt.s32.totalorder %s857_s10, %s590_s22 }
  0x47   : > { %p587_p8 = pnand %p586_p1, %p793_p13  ;;  %p593_p2 = scmp.lt.s32.totalorder %s591_s1, %s585_s29 }
  0x49   : > { %p588_p12 = pneg %p587_p8  ;;  %p594_p3 = por %p593_p2, %p592_p0 }
  0x4a   : > { %271 = vadd.xlane.f32.xlu0 %v270_v7 }
  0x4b   : > { %p595_p5 = pnand %p594_p3, %p588_p12 }
  0xcf   : > { %v269_v8 = vpop.xlane.xlu0 %268 }
  0xd0   : > { %v274_v9 = vmul.f32 0.03125, %v269_v8 }
  0xd2   : > { %v276_v10 = vsub.f32 %v264_v3, %v274_v9 }
  0xd3   : > { %v272_v11 = vpop.xlane.xlu0 %271 }
  0xd4   : > { %v275_v12 = vmul.f32 0.03125, %v272_v11  ;;  %v278_v13 = vmul.f32 %v276_v10, %v276_v10 }
  0xd6   : > { %v277_v14 = vsub.f32 %v265_v5, %v275_v12  ;;  %v280_v15 = vsel %vm266_vm0, %v278_v13, 0.0 }
  0xd7   : > { %281 = vadd.xlane.f32.xlu1 %v280_v15 }
  0xd8   : > { %v279_v16 = vmul.f32 %v277_v14, %v277_v14 }
  0xda   : > { %v283_v17 = vsel %vm266_vm0, %v279_v16, 0.0 }
  0xdb   : > { %284 = vadd.xlane.f32.xlu1 %v283_v17 }
 0x160   : > { %v282_v18 = vpop.xlane.xlu1 %281 }
 0x161   : > { %v286_v19 = vmul.f32 0.03125, %v282_v18 }
 0x163   : > { %v288_v20 = vadd.f32 1e-12, %v286_v19 }
 0x164   : > { %v285_v21 = vpop.xlane.xlu1 %284 }
 0x165   : > { %527 = vrsqrt.f32 %v288_v20  ;;  %v287_v22 = vmul.f32 0.03125, %v285_v21 }
 0x167   : > { %v289_v23 = vadd.f32 1e-12, %v287_v22 }
 0x169   : > { %529 = vrsqrt.f32 %v289_v23 }
 0x172   : > { %v528_v24 = vpop.eup %527 }
 0x173   : > { %v292_v26 = vmul.f32 %v528_v24, %v276_v10 }
 0x175   : > { %v301_v28 = vmul.f32 %v441_v25, %v292_v26 }
 0x176   : > { %v530_v29 = vpop.eup %529 }
 0x177   : > { %v310_v30 = vadd.f32 %v442_v27, %v301_v28  ;;  %v293_v31 = vmul.f32 %v530_v29, %v277_v14 }
 0x179   : > { %v302_v32 = vmul.f32 %v441_v25, %v293_v31  ;;  %312 = vst.msk [vmem:[%s256_s9] sm:$0xff] %vm266_vm0, %v310_v30 }
 0x17b   : > { %v311_v33 = vadd.f32 %v442_v27, %v302_v32 }
 0x17d   : > { %313 = vst.msk [vmem:[%s256_s9 + $0x8] sm:$0xff] %vm266_vm0, %v311_v33 }
 0x17e   : > { %598 = shalt.err (!%p595_p5)
}
 0x17f   : > { %s599_s30 = scalar_lea.hbm %s855_s11, 256  ;;  %s603_s25 = scalar_lea.hbm %s910_s4, 512 }
 0x180   : > { %p600_p7 = scmp.ne.s32.totalorder %s855_s11, %s599_s30  ;;  %p604_p9 = scmp.lt.s32.totalorder %s855_s11, %s910_s4 }
 0x181   : > { %p605_p11 = scmp.lt.s32.totalorder %s603_s25, %s599_s30 }
 0x182   : > { %p601_p4 = pnand %p600_p7, %p793_p13 }
 0x183   : > { %p606_p10 = por %p605_p11, %p604_p9 }
 0x184   : > { %p602_p6 = pneg %p601_p4 }
 0x186   : > { %p607_p1 = pnand %p606_p10, %p602_p6 }
 0x188   : > { %610 = shalt.err (!%p607_p1)
}
 0x189   : > { %s676_s8 = smov 128   ;;  %s677_s9 = smov 8  }
 0x18a   : > { %456 = dma.vmem_to_hbm [thread:$0]  (%p793_p13), %s857_s10, 256, %s855_s11, %s315_s18, %s676_s8, %s676_s8, %s677_s9  }
 0x18b PF: > { %s345_s24 = sand.u32 1, %s649_s15   ;;  %p928_p8 = scmp.ne.s32.totalorder %s918_s26, 0 }
 0x18c   : > { %p929_p12 = scmp.ge.s32.totalorder %s669_s20, 2  ;;  %s346_s14 = scalar_lea.sflag [#allocation4], %s345_s24 }
 0x18e   : > { %p467_p0 = pnand %p929_p12, %p928_p8 }
 0x190   : > { %p468_p2 = pneg %p467_p0 }
 0x192   : > { %644 = dma.done.wait (%p468_p2), %s346_s14, 256  }
 0x193   : > { %646 = vsyncadd (%p468_p2), %s346_s14, 4294967040  ;;  %s21_s20 = sadd.s32 1, %s669_s20   ;;  %s930_s15 = smov %s653_s16 }
 0x194   : > { %p18_p3 = scmp.ge.s32.totalorder %s21_s20, 4   ;;  %s931_s16 = smov %s657_s17 }
 0x195   : > { %s932_s17 = smov %s802_s28  ;;  %s933_s18 = smov %s665_s19 }
 0x196   : > { %s934_s19 = smov %s936_s5  ;;  %20 = sbr.rel (!%p18_p3) target bundleno = 9 (0x9), region = 86 }
 0x19b   :  { %351 = vsyncpa [#allocation3], 1 }
 0x19c   :  { %353 = vsyncpa [#allocation3 + $0x1], 1 }
 0x19d   :  { %354 = vsyncpa [#allocation6], 1 }
 0x19e   :  { %355 = vsyncpa [#allocation4], 1 }
 0x19f   :  { %357 = vsyncpa [#allocation4 + $0x1], 1 }

</bundles_post_ra>
